<compile_context>
chip_gen: v7x
topology: tpu7x:2x2x1
jax: 0.10.0
libtpu: 0.0.40
codegen_flags: <defaults>
</compile_context>

<pallas_src>
import jax
import jax.numpy as jnp
from jax.experimental import pallas as pl
from jax.experimental.pallas import tpu as pltpu


def _round_up(x, m):
    return (x + m - 1) // m * m


# ---------------------------------------------------------------------------
# Kernel body: one (token-tile i, intermediate-tile k) step.
# ---------------------------------------------------------------------------
def qwen_mlp_kernel(x_ref, wgu_ref, wd_ref, o_ref, acc_ref):
    k = pl.program_id(1)

    @pl.when(k == 0)
    def _():
        acc_ref[...] = jnp.zeros_like(acc_ref)

    ti = wd_ref.shape[0]
    x = x_ref[...]                                                        # (tm, H) bf16
    # Fused gate|up projection: one MXU op producing (tm, 2*ti) f32.
    gu = jnp.dot(x, wgu_ref[...], preferred_element_type=jnp.float32)
    gate = gu[:, :ti]
    up = gu[:, ti:]
    # SiLU(gate) * up: sigmoid on the EUP, muls on the VPU (hidden under MXU work).
    h = gate * jax.nn.sigmoid(gate) * up                                  # (tm, ti) f32
    acc_ref[...] += jnp.dot(h.astype(wd_ref.dtype), wd_ref[...],
                            preferred_element_type=jnp.float32)           # (tm, H) f32

    @pl.when(k == pl.num_programs(1) - 1)
    def _():
        o_ref[...] = acc_ref[...].astype(o_ref.dtype)


# ---------------------------------------------------------------------------
# Generation detection + tile selection
# ---------------------------------------------------------------------------
def _tpu_generation():
    kind = ""
    try:
        kind = jax.devices()[0].device_kind.lower()
    except Exception:
        pass
    vmem_cap = 128 << 20
    try:
        info = pltpu.get_tpu_info()
        vmem_cap = int(getattr(info, "vmem_capacity_bytes", vmem_cap))
    except Exception:
        pass
    if "v7" in kind and vmem_cap > (64 << 20):   # belt-and-braces for v7x
        vmem_cap = 64 << 20
    return kind, vmem_cap


def _gen_params(kind, vmem_cap):
    """(tm_target, tensorcores_per_chip, resident_bufs, weight_bufs)."""
    if "v7" in kind:
        params = (512, 2, 1, 2)     # roofline ~311 FLOP/B; 64 MiB VMEM -> single-buffer x/out
    elif "v6" in kind:
        params = (1024, 1, 2, 2)    # roofline ~655 FLOP/B -> big token tiles
    elif "v5" in kind and ("lite" in kind or "5e" in kind):
        params = (256, 1, 2, 3)     # already ~compute-bound; spend spare VMEM on deeper weight bufs
    else:
        params = (512, 1, 2, 2)
    tm_target, n_tc, res, wbufs = params
    if vmem_cap <= (80 << 20):
        res = 1                     # VMEM-tight chip: single-buffer the k-invariant blocks
    return tm_target, n_tc, res, wbufs


def _choose_tiles(T, H, I, tm_req, ti_req, tm_target, n_tc,
                  resident_bufs, weight_bufs, vmem_cap):
    # --- token tile -----------------------------------------------------------
    tm = tm_req if tm_req is not None else tm_target
    tm = max(8, min(tm, _round_up(T, 16)))
    if n_tc > 1 and T > 128 * n_tc:
        # Keep >= one token tile per TensorCore so the 'parallel' axis feeds both.
        tm = min(tm, max(128, _round_up(pl.cdiv(T, n_tc), 128)))
    # --- intermediate tile ----------------------------------------------------
    ti = ti_req if ti_req is not None else 1024
    ti = max(128, _round_up(ti, 128))
    ti = min(ti, _round_up(I, 128))

    budget = int(0.8 * vmem_cap)

    def footprint(tm_, ti_):
        bpe = 2  # bf16
        return (resident_bufs * 2 * tm_ * H * bpe      # x tile + out tile
                + weight_bufs * 3 * H * ti_ * bpe      # (H, 2*ti) + (ti, H) weight slabs
                + tm_ * H * 4                          # f32 accumulator scratch
                + 4 * tm_ * ti_ * 4)                   # f32 gate/up/h intermediates

    while footprint(tm, ti) > budget and ti > 128:
        ti = max(128, ti - 128)
    while footprint(tm, ti) > budget and tm > 128:
        tm = max(128, tm - 128)
    return tm, ti


def _prepare_weights(w_gate, w_up, w_down, ti, dtype):
    """Pad I to a multiple of ti and pre-block so each k-slab is HBM-contiguous."""
    H, I = w_gate.shape
    i_pad = _round_up(I, ti)
    if i_pad != I:
        # Zero padding is exact: silu(0)*0 == 0 and the padded Wd rows are zero.
        w_gate = jnp.pad(w_gate, ((0, 0), (0, i_pad - I)))
        w_up = jnp.pad(w_up, ((0, 0), (0, i_pad - I)))
        w_down = jnp.pad(w_down, ((0, i_pad - I), (0, 0)))
    n_i = i_pad // ti
    wg_b = w_gate.astype(dtype).reshape(H, n_i, ti)
    wu_b = w_up.astype(dtype).reshape(H, n_i, ti)
    wgu = jnp.transpose(jnp.concatenate([wg_b, wu_b], axis=-1), (1, 0, 2))  # (n_i, H, 2*ti)
    wd_b = w_down.astype(dtype).reshape(n_i, ti, H)                         # (n_i, ti, H)
    return wgu, wd_b, n_i, i_pad


def _spec(block_shape, index_map, bufs):
    if bufs != 2 and hasattr(pl, "Buffered"):
        return pl.BlockSpec(block_shape, index_map, pipeline_mode=pl.Buffered(bufs))
    return pl.BlockSpec(block_shape, index_map)


# ---------------------------------------------------------------------------
# Public wrapper
# ---------------------------------------------------------------------------
def qwen_mlp(x, w_gate, w_up, w_down, *, tm=None, ti=None,
             compute_dtype=jnp.bfloat16):
    """x: (T, H); w_gate/w_up: (H, I); w_down: (I, H). Returns (T, H) in x.dtype."""
    T, H = x.shape
    I = w_gate.shape[1]
    assert H % 128 == 0, "hidden_size must be 128-aligned"
    # TODO(synk): add lane-dim padding for hidden sizes that are not multiples of 128.

    out_dtype = x.dtype
    kind, vmem_cap = _tpu_generation()
    tm_target, n_tc, resident_bufs, weight_bufs = _gen_params(kind, vmem_cap)
    vmem_limit = int(0.9 * vmem_cap)

    def run(res_bufs, w_bufs):
        tm_, ti_ = _choose_tiles(T, H, I, tm, ti, tm_target, n_tc,
                                 res_bufs, w_bufs, vmem_cap)
        t_pad = _round_up(T, tm_)
        x_p = x.astype(compute_dtype)
        if t_pad != T:
            x_p = jnp.pad(x_p, ((0, t_pad - T), (0, 0)))
        wgu, wd_b, n_i, i_pad = _prepare_weights(w_gate, w_up, w_down, ti_, compute_dtype)

        t_tiles = t_pad // tm_
        bpe = jnp.dtype(compute_dtype).itemsize
        cost = pl.CostEstimate(
            flops=6 * t_pad * H * i_pad,
            transcendentals=t_pad * i_pad,
            # Weights are re-streamed once per token tile.
            bytes_accessed=(t_tiles * 3 * H * i_pad + 2 * t_pad * H) * bpe,
        )

        out = pl.pallas_call(
            qwen_mlp_kernel,
            out_shape=jax.ShapeDtypeStruct((t_pad, H), out_dtype),
            grid_spec=pltpu.PrefetchScalarGridSpec(
                num_scalar_prefetch=0,
                grid=(t_tiles, n_i),
                in_specs=[
                    _spec((tm_, H), lambda i, k: (i, 0), res_bufs),          # token tile
                    _spec((None, H, 2 * ti_), lambda i, k: (k, 0, 0), w_bufs),  # gate|up slab
                    _spec((None, ti_, H), lambda i, k: (k, 0, 0), w_bufs),      # down slab
                ],
                out_specs=_spec((tm_, H), lambda i, k: (i, 0), res_bufs),
                scratch_shapes=[pltpu.VMEM((tm_, H), jnp.float32)],
            ),
            compiler_params=pltpu.CompilerParams(
                dimension_semantics=("parallel", "arbitrary"),
                vmem_limit_bytes=vmem_limit,
            ),
            cost_estimate=cost,
        )(x_p, wgu, wd_b)
        return out[:T]

    if resident_bufs == 2 and weight_bufs == 2:
        return run(2, 2)
    try:
        return run(resident_bufs, weight_bufs)
    except Exception:
        # pipeline_mode customization unsupported on this jax/chip -> default buffering.
        return run(2, 2)


def qwen_mlp_reference(x, w_gate, w_up, w_down, compute_dtype=jnp.bfloat16):
    """Same numerics path as the kernel (bf16 operands, f32 accumulation)."""
    out_dtype = x.dtype
    x = x.astype(compute_dtype)
    w_gate = w_gate.astype(compute_dtype)
    w_up = w_up.astype(compute_dtype)
    w_down = w_down.astype(compute_dtype)
    gate = jnp.dot(x, w_gate, preferred_element_type=jnp.float32)
    up = jnp.dot(x, w_up, preferred_element_type=jnp.float32)
    h = (gate * jax.nn.sigmoid(gate) * up).astype(compute_dtype)
    out = jnp.dot(h, w_down, preferred_element_type=jnp.float32)
    return out.astype(out_dtype)


if __name__ == "__main__":
    # Small QwenMLP-consistent shapes (hidden/intermediate scaled down); the
    # non-multiple intermediate size and non-multiple token count exercise the
    # padding paths.
    batch, seq = 2, 10
    hidden_size = 128
    intermediate_size = 320

    key = jax.random.PRNGKey(0)
    kx, kg, ku, kd = jax.random.split(key, 4)

    x = jax.random.normal(kx, (batch, seq, hidden_size), dtype=jnp.float32)
    # nn.Linear(H, I, bias=False).weight has shape (I, H); we store its transpose.
    scale_in = 1.0 / (hidden_size ** 0.5)
    scale_mid = 1.0 / (intermediate_size ** 0.5)
    w_gate = jax.random.normal(kg, (hidden_size, intermediate_size), jnp.float32) * scale_in
    w_up = jax.random.normal(ku, (hidden_size, intermediate_size), jnp.float32) * scale_in
    w_down = jax.random.normal(kd, (intermediate_size, hidden_size), jnp.float32) * scale_mid

    x2d = x.reshape(batch * seq, hidden_size)
    ref = qwen_mlp_reference(x2d, w_gate, w_up, w_down)

    # 1) auto-tiled path
    out = qwen_mlp(x2d, w_gate, w_up, w_down)
    jax.block_until_ready(out)
    assert out.shape == (batch * seq, hidden_size)
    assert jnp.allclose(out.astype(jnp.float32), ref.astype(jnp.float32),
                        atol=2e-2, rtol=2e-2), "mismatch vs reference (auto tiles)"

    # 2) forced small tiles: multiple k steps + multiple token tiles + I padding
    out2 = qwen_mlp(x2d, w_gate, w_up, w_down, tm=16, ti=128)
    jax.block_until_ready(out2)
    assert jnp.allclose(out2.astype(jnp.float32), ref.astype(jnp.float32),
                        atol=2e-2, rtol=2e-2), "mismatch vs reference (small tiles)"

    print("KERNEL_OK")
</pallas_src>

<mosaic_0001>
module attributes {stable_mosaic.version = 11 : i64} {
  func.func @qwen_mlp_kernel(%arg0: i32, %arg1: i32, %arg2: memref<32x128xbf16, #tpu.memory_space<vmem>>, %arg3: memref<1x128x768xbf16, #tpu.memory_space<vmem>>, %arg4: memref<1x384x128xbf16, #tpu.memory_space<vmem>>, %arg5: memref<32x128xf32, #tpu.memory_space<vmem>>, %arg6: memref<32x128xf32, #tpu.memory_space<vmem>>) attributes {dimension_semantics = [#tpu.dimension_semantics<parallel>, #tpu.dimension_semantics<arbitrary>], iteration_bounds = array<i64: 1, 1>, scalar_prefetch = 0 : i64, scratch_operands = 1 : i64, tpu.core_type = #tpu.core_type<tc>, window_params = [{transform_indices = @transform_0, window_bounds = array<i64: 32, 128>}, {transform_indices = @transform_1, window_bounds = array<i64: 1, 128, 768>}, {transform_indices = @transform_2, window_bounds = array<i64: 1, 384, 128>}, {transform_indices = @transform_3, window_bounds = array<i64: 32, 128>}]} {
    %c0_i32 = arith.constant 0 : i32
    %0 = arith.cmpi eq, %arg1, %c0_i32 : i32
    %1 = arith.extui %0 : i1 to i32
    %c0_i32_0 = arith.constant 0 : i32
    %2 = arith.cmpi ne, %1, %c0_i32_0 : i32
    scf.if %2 {
      %cst_16 = arith.constant 0.000000e+00 : f32
      %26 = vector.broadcast %cst_16 : f32 to vector<32x128xf32>
      %c0_17 = arith.constant 0 : index
      %c0_18 = arith.constant 0 : index
      %27 = vector.load %arg6[%c0_17, %c0_18] : memref<32x128xf32, #tpu.memory_space<vmem>>, vector<32x128xf32>
      tpu.vector_store %arg6[%c0_17, %c0_18], %26 {strides = array<i32>} : memref<32x128xf32, #tpu.memory_space<vmem>>, vector<32x128xf32>,
    } else {
    }
    %c0 = arith.constant 0 : index
    %c0_1 = arith.constant 0 : index
    %3 = vector.load %arg2[%c0, %c0_1] : memref<32x128xbf16, #tpu.memory_space<vmem>>, vector<32x128xbf16>
    %c0_2 = arith.constant 0 : index
    %c0_3 = arith.constant 0 : index
    %c0_4 = arith.constant 0 : index
    %4 = vector.load %arg3[%c0_2, %c0_3, %c0_4] : memref<1x128x768xbf16, #tpu.memory_space<vmem>>, vector<1x128x768xbf16>
    %5 = vector.shape_cast %4 : vector<1x128x768xbf16> to vector<128x768xbf16>
    %cst = arith.constant dense<0.000000e+00> : vector<32x768xf32>
    %6 = tpu.matmul %3, %5, %cst {dimension_numbers = #tpu.dot_dimension_numbers<[1], [0], [0], [1], [0, 0, 1, 1], [], []>} : vector<32x128xbf16>, vector<128x768xbf16>, vector<32x768xf32> -> vector<32x768xf32>
    %7 = vector.extract_strided_slice %6 {offsets = [0, 0], sizes = [32, 384], strides = [1, 1]} : vector<32x768xf32> to vector<32x384xf32>
    %8 = vector.extract_strided_slice %6 {offsets = [0, 384], sizes = [32, 384], strides = [1, 1]} : vector<32x768xf32> to vector<32x384xf32>
    %9 = arith.negf %7 : vector<32x384xf32>
    %10 = math.exp %9 : vector<32x384xf32>
    %cst_5 = arith.constant 1.000000e+00 : f32
    %11 = vector.broadcast %cst_5 : f32 to vector<32x384xf32>
    %12 = arith.addf %11, %10 : vector<32x384xf32>
    %13 = arith.divf %11, %12 : vector<32x384xf32>
    %14 = arith.mulf %7, %13 : vector<32x384xf32>
    %15 = arith.mulf %14, %8 : vector<32x384xf32>
    %c0_6 = arith.constant 0 : index
    %c0_7 = arith.constant 0 : index
    %16 = vector.load %arg6[%c0_6, %c0_7] : memref<32x128xf32, #tpu.memory_space<vmem>>, vector<32x128xf32>
    %17 = arith.truncf %15 : vector<32x384xf32> to vector<32x384xbf16>
    %c0_8 = arith.constant 0 : index
    %c0_9 = arith.constant 0 : index
    %c0_10 = arith.constant 0 : index
    %18 = vector.load %arg4[%c0_8, %c0_9, %c0_10] : memref<1x384x128xbf16, #tpu.memory_space<vmem>>, vector<1x384x128xbf16>
    %19 = vector.shape_cast %18 : vector<1x384x128xbf16> to vector<384x128xbf16>
    %cst_11 = arith.constant dense<0.000000e+00> : vector<32x128xf32>
    %20 = tpu.matmul %17, %19, %cst_11 {dimension_numbers = #tpu.dot_dimension_numbers<[1], [0], [0], [1], [0, 0, 1, 1], [], []>} : vector<32x384xbf16>, vector<384x128xbf16>, vector<32x128xf32> -> vector<32x128xf32>
    %21 = arith.addf %16, %20 : vector<32x128xf32>
    %c0_12 = arith.constant 0 : index
    %c0_13 = arith.constant 0 : index
    %22 = vector.load %arg6[%c0_12, %c0_13] : memref<32x128xf32, #tpu.memory_space<vmem>>, vector<32x128xf32>
    tpu.vector_store %arg6[%c0_12, %c0_13], %21 {strides = array<i32>} : memref<32x128xf32, #tpu.memory_space<vmem>>, vector<32x128xf32>,
    %c0_i32_14 = arith.constant 0 : i32
    %23 = arith.cmpi eq, %arg1, %c0_i32_14 : i32
    %24 = arith.extui %23 : i1 to i32
    %c0_i32_15 = arith.constant 0 : i32
    %25 = arith.cmpi ne, %24, %c0_i32_15 : i32
    scf.if %25 {
      %c0_16 = arith.constant 0 : index
      %c0_17 = arith.constant 0 : index
      %26 = vector.load %arg6[%c0_16, %c0_17] : memref<32x128xf32, #tpu.memory_space<vmem>>, vector<32x128xf32>
      %c0_18 = arith.constant 0 : index
      %c0_19 = arith.constant 0 : index
      %27 = vector.load %arg5[%c0_18, %c0_19] : memref<32x128xf32, #tpu.memory_space<vmem>>, vector<32x128xf32>
      tpu.vector_store %arg5[%c0_18, %c0_19], %26 {strides = array<i32>} : memref<32x128xf32, #tpu.memory_space<vmem>>, vector<32x128xf32>,
    } else {
    }
    return
  }
  func.func @transform_0(%arg0: i32, %arg1: i32) -> (i32, i32) {
    %c0_i32 = arith.constant 0 : i32
    %c0_i32_0 = arith.constant 0 : i32
    return %arg0, %c0_i32 : i32, i32
  }
  func.func @transform_1(%arg0: i32, %arg1: i32) -> (i32, i32, i32) {
    %c0_i32 = arith.constant 0 : i32
    %c0_i32_0 = arith.constant 0 : i32
    %c0_i32_1 = arith.constant 0 : i32
    return %arg1, %c0_i32, %c0_i32_0 : i32, i32, i32
  }
  func.func @transform_2(%arg0: i32, %arg1: i32) -> (i32, i32, i32) {
    %c0_i32 = arith.constant 0 : i32
    %c0_i32_0 = arith.constant 0 : i32
    %c0_i32_1 = arith.constant 0 : i32
    return %arg1, %c0_i32, %c0_i32_0 : i32, i32, i32
  }
  func.func @transform_3(%arg0: i32, %arg1: i32) -> (i32, i32) {
    %c0_i32 = arith.constant 0 : i32
    %c0_i32_0 = arith.constant 0 : i32
    return %arg0, %c0_i32 : i32, i32
  }
}

</mosaic_0001>

<bundles_post_ra>
// kernel: tpu_custom_call.1
= control target key start
LH: loop header
LB: loop body
LE: loop exit
PB: predicated region body
PF: predicated region fallthrough
CT: control target
= control target key end

     0   :  { %8 = vsyncpa [#allocation4], 0  ;;  %s1501_s0 = inlined_call_operand.hbm [shape: bf16[32,128], index: 0, kind: input, shape index: {}]   ;;  %s1502_s1 = inlined_call_operand.hbm [shape: bf16[1,128,768], index: 1, kind: input, shape index: {}]   ;;  %s1503_s2 = inlined_call_operand.hbm [shape: bf16[1,384,128], index: 2, kind: input, shape index: {}]   ;;  %s1504_s3 = inlined_call_operand.hbm [shape: f32[32,128], index: 3, kind: output, shape index: {}]  }
   0x1   :  { %9 = vsyncpa [#allocation7], 0 }
   0x2   :  { %10 = vsyncpa [#allocation5], 0  ;;  %s1356_s12 = smov [#allocation6]   ;;  %s1262_s16 = scalar_lea.hbm %s1502_s1, 6144 }
   0x3   :  { %s28_s13 = sshll.u32 %s1356_s12, 4  ;;  %p1263_p0 = scmp.ne.s32.totalorder %s1502_s1, %s1262_s16  ;;  %s29_s13 = int_to_ptr.vmem [resolvable:$true] %s28_s13 }
   0x4   :  { %p1266_p1 = scmp.lt.u32.totalorder %s1262_s16, %s1502_s1 }
   0x6   :  { %p1268_p2 = pnand %p1266_p1, %p1263_p0 }
   0x8   :  { %1271 = shalt.err (!%p1268_p2)
}
   0x9   :  { %s1272_s21 = scalar_lea.vmem %s29_s13, 6144  ;;  %p1277_p4 = scmp.lt.s32.totalorder %s29_s13, %s29_s13 }
   0xa   :  { %p1273_p3 = scmp.ne.s32.totalorder %s29_s13, %s1272_s21  ;;  %p1278_p5 = scmp.lt.s32.totalorder %s1272_s21, %s1272_s21 }
   0xc   :  { %p1279_p6 = por %p1278_p5, %p1277_p4 }
   0xe   :  { %p1280_p7 = pnand %p1279_p6, %p1273_p3 }
  0x10   :  { %1283 = shalt.err (!%p1280_p7)
}
  0x11   :  { %s1357_s22 = smov 384   ;;  %s1358_s23 = smov 24  }
  0x12   :  { %34 = dma.hbm_to_vmem [thread:$0]  %s1502_s1, 6144, %s29_s13, [#allocation7], %s1357_s22, %s1357_s22, %s1358_s23  }
  0x13   :  { %s1359_s26 = smov [#allocation3]   ;;  %s1284_s30 = scalar_lea.hbm %s1501_s0, 256 }
  0x14   :  { %s16_s27 = sshll.u32 %s1359_s26, 4  ;;  %p1285_p8 = scmp.ne.s32.totalorder %s1501_s0, %s1284_s30  ;;  %s17_s27 = int_to_ptr.vmem [resolvable:$true] %s16_s27 }
  0x15   :  { %p1288_p9 = scmp.lt.u32.totalorder %s1284_s30, %s1501_s0 }
  0x17   :  { %p1290_p10 = pnand %p1288_p9, %p1285_p8 }
  0x19   :  { %1293 = shalt.err (!%p1290_p10)
}
  0x1a   :  { %s1294_s8 = scalar_lea.vmem %s17_s27, 256  ;;  %p1299_p12 = scmp.lt.s32.totalorder %s17_s27, %s17_s27 }
  0x1b   :  { %p1295_p11 = scmp.ne.s32.totalorder %s17_s27, %s1294_s8  ;;  %p1300_p13 = scmp.lt.s32.totalorder %s1294_s8, %s1294_s8 }
  0x1d   :  { %p1301_p0 = por %p1300_p13, %p1299_p12 }
  0x1f   :  { %p1302_p1 = pnand %p1301_p0, %p1295_p11 }
  0x21   :  { %1305 = shalt.err (!%p1302_p1)
}
  0x22   :  { %s1360_s1 = smov 64   ;;  %s1361_s9 = smov 4  }
  0x23   :  { %22 = dma.hbm_to_vmem [thread:$0]  %s1501_s0, 256, %s17_s27, [#allocation4], %s1360_s1, %s1360_s1, %s1361_s9  }
  0x24   :  { %s1362_s12 = smov [#allocation8]   ;;  %s1306_s16 = scalar_lea.hbm %s1503_s2, 3072 }
  0x25   :  { %s40_s13 = sshll.u32 %s1362_s12, 4  ;;  %p1307_p2 = scmp.ne.s32.totalorder %s1503_s2, %s1306_s16  ;;  %s41_s13 = int_to_ptr.vmem [resolvable:$true] %s40_s13 }
  0x26   :  { %p1310_p3 = scmp.lt.u32.totalorder %s1306_s16, %s1503_s2 }
  0x28   :  { %p1312_p4 = pnand %p1310_p3, %p1307_p2 }
  0x2a   :  { %1315 = shalt.err (!%p1312_p4)
}
  0x2b   :  { %s1316_s21 = scalar_lea.vmem %s41_s13, 3072  ;;  %p1321_p6 = scmp.lt.s32.totalorder %s41_s13, %s41_s13 }
  0x2c   :  { %p1317_p5 = scmp.ne.s32.totalorder %s41_s13, %s1316_s21  ;;  %p1322_p7 = scmp.lt.s32.totalorder %s1316_s21, %s1316_s21 }
  0x2e   :  { %p1323_p8 = por %p1322_p7, %p1321_p6 }
  0x30   :  { %p1324_p9 = pnand %p1323_p8, %p1317_p5 }
  0x32   :  { %1327 = shalt.err (!%p1324_p9)
}
  0x33   :  { %46 = dma.hbm_to_vmem [thread:$0]  %s1503_s2, 3072, %s41_s13, [#allocation7], %s1360_s1, %s1360_s1, %s1361_s9  }
  0x34   :  { %1350 = dma.done.wait [#allocation4], 256  }
  0x35   :  { %1351 = vsyncadd [#allocation4], 4294967040 }
  0x36   :  { %1352 = dma.done.wait [#allocation7], 9216  }
  0x37   :  { %1353 = vsyncadd [#allocation7], 4294958080  ;;  %v1363_v0 = vmov 0   ;;  %v1116_v1 = vld [vmem:[#allocation6 + $0x4] ss:$24 sps:$4 sm:$0xff]   ;;  %v1164_v34 = vld [vmem:[#allocation3] sm:$0xff]  }
  0x38   :  { %401 = vmatprep.mubr.bf16.mxu0 %v1363_v0  ;;  %454 = vmatprep.mubr.bf16.mxu1 %v1363_v0  ;;  %v1118_v2 = vld [vmem:[#allocation6 + $0xc] ss:$24 sps:$4 sm:$0xff]   ;;  %v1120_v3 = vld [vmem:[#allocation6] ss:$24 sps:$4 sm:$0xff]   ;;  %v1124_v6 = vld [vmem:[#allocation6 + $0x3c] ss:$24 sps:$4 sm:$0xff]  }
  0x39   :  { %369 = vmatprep.subr.bf16.mxu0 %v1116_v1  ;;  %v1121_v4 = vld [vmem:[#allocation6 + $0x8] ss:$24 sps:$4 sm:$0xff]   ;;  %422 = vmatprep.subr.bf16.mxu1 %v1118_v2  ;;  %v1122_v5 = vld [vmem:[#allocation6 + $0x34] ss:$24 sps:$4 sm:$0xff]   ;;  %v1127_v8 = vld [vmem:[#allocation6 + $0x38] ss:$24 sps:$4 sm:$0xff]  }
  0x3a   :  { %370 = vmatpush1.bf16.msra.mxu0 %v1120_v3  ;;  %423 = vmatpush1.bf16.msra.mxu1 %v1121_v4  ;;  %v1126_v7 = vld [vmem:[#allocation6 + $0x30] ss:$24 sps:$4 sm:$0xff]   ;;  %v1128_v9 = vld [vmem:[#allocation6 + $0x64] ss:$24 sps:$4 sm:$0xff]   ;;  %v1132_v11 = vld [vmem:[#allocation6 + $0x60] ss:$24 sps:$4 sm:$0xff]  }
  0x3b   :  { %371 = vmatprep.subr.bf16.mxu0 %v1122_v5  ;;  %424 = vmatprep.subr.bf16.mxu1 %v1124_v6  ;;  %v1130_v10 = vld [vmem:[#allocation6 + $0x6c] ss:$24 sps:$4 sm:$0xff]   ;;  %v1133_v12 = vld [vmem:[#allocation6 + $0x68] ss:$24 sps:$4 sm:$0xff]   ;;  %v1136_v14 = vld [vmem:[#allocation6 + $0x9c] ss:$24 sps:$4 sm:$0xff]  }
  0x3c   :  { %v1134_v13 = vld [vmem:[#allocation6 + $0x94] ss:$24 sps:$4 sm:$0xff]   ;;  %v1138_v15 = vld [vmem:[#allocation6 + $0x90] ss:$24 sps:$4 sm:$0xff]   ;;  %v1140_v17 = vld [vmem:[#allocation6 + $0xc4] ss:$24 sps:$4 sm:$0xff]  }
  0x3d   :  { %v1139_v16 = vld [vmem:[#allocation6 + $0x98] ss:$24 sps:$4 sm:$0xff]   ;;  %v1142_v18 = vld [vmem:[#allocation6 + $0xcc] ss:$24 sps:$4 sm:$0xff]   ;;  %v1145_v20 = vld [vmem:[#allocation6 + $0xc8] ss:$24 sps:$4 sm:$0xff]  }
  0x3e   :  { %372 = vmatpush1.bf16.msra.mxu0 %v1126_v7  ;;  %425 = vmatpush1.bf16.msra.mxu1 %v1127_v8  ;;  %v1144_v19 = vld [vmem:[#allocation6 + $0xc0] ss:$24 sps:$4 sm:$0xff]   ;;  %v1146_v21 = vld [vmem:[#allocation6 + $0xf4] ss:$24 sps:$4 sm:$0xff]   ;;  %v1150_v23 = vld [vmem:[#allocation6 + $0xf0] ss:$24 sps:$4 sm:$0xff]  }
  0x3f   :  { %373 = vmatprep.subr.bf16.mxu0 %v1128_v9  ;;  %426 = vmatprep.subr.bf16.mxu1 %v1130_v10  ;;  %v1148_v22 = vld [vmem:[#allocation6 + $0xfc] ss:$24 sps:$4 sm:$0xff]   ;;  %v1151_v24 = vld [vmem:[#allocation6 + $0xf8] ss:$24 sps:$4 sm:$0xff]   ;;  %v1154_v26 = vld [vmem:[#allocation6 + $0x12c] ss:$24 sps:$4 sm:$0xff]  }
  0x40   :  { %v1152_v25 = vld [vmem:[#allocation6 + $0x124] ss:$24 sps:$4 sm:$0xff]   ;;  %v1156_v27 = vld [vmem:[#allocation6 + $0x120] ss:$24 sps:$4 sm:$0xff]   ;;  %v1158_v29 = vld [vmem:[#allocation6 + $0x154] ss:$24 sps:$4 sm:$0xff]  }
  0x41   :  { %v1157_v28 = vld [vmem:[#allocation6 + $0x128] ss:$24 sps:$4 sm:$0xff]   ;;  %v1160_v30 = vld [vmem:[#allocation6 + $0x15c] ss:$24 sps:$4 sm:$0xff]   ;;  %v1163_v32 = vld [vmem:[#allocation6 + $0x158] ss:$24 sps:$4 sm:$0xff]  }
  0x42   :  { %374 = vmatpush1.bf16.msra.mxu0 %v1132_v11  ;;  %427 = vmatpush1.bf16.msra.mxu1 %v1133_v12  ;;  %v1162_v31 = vld [vmem:[#allocation6 + $0x150] ss:$24 sps:$4 sm:$0xff]   ;;  %v1167_v33 = vld [vmem:[#allocation6 + $0x14] ss:$24 sps:$4 sm:$0xff]   ;;  %v1170_v36 = vld [vmem:[#allocation6 + $0x44] ss:$24 sps:$4 sm:$0xff]  }
  0x43   :  { %375 = vmatprep.subr.bf16.mxu0 %v1134_v13  ;;  %428 = vmatprep.subr.bf16.mxu1 %v1136_v14  ;;  %v1165_v35 = vld [vmem:[#allocation6 + $0x10] ss:$24 sps:$4 sm:$0xff]   ;;  %v1168_v37 = vld [vmem:[#allocation6 + $0x40] ss:$24 sps:$4 sm:$0xff]   ;;  %v1174_v38 = vld [vmem:[#allocation6 + $0x74] ss:$24 sps:$4 sm:$0xff]  }
  0x44   :  { %v1171_v39 = vld [vmem:[#allocation3 + $0x8] sm:$0xff]   ;;  %v1172_v40 = vld [vmem:[#allocation6 + $0x70] ss:$24 sps:$4 sm:$0xff]   ;;  %v1180_v43 = vld [vmem:[#allocation6 + $0xd4] ss:$24 sps:$4 sm:$0xff]   ;;  %s1364_s2 = smov [#allocation9]  }
  0x45   :  { %v1177_v41 = vld [vmem:[#allocation6 + $0xa4] ss:$24 sps:$4 sm:$0xff]   ;;  %v1175_v42 = vld [vmem:[#allocation6 + $0xa0] ss:$24 sps:$4 sm:$0xff]   ;;  %v1178_v44 = vld [vmem:[#allocation6 + $0xd0] ss:$24 sps:$4 sm:$0xff]  }
  0x46   :  { %376 = vmatpush1.bf16.msra.mxu0 %v1138_v15  ;;  %429 = vmatpush1.bf16.msra.mxu1 %v1139_v16  ;;  %v1183_v45 = vld [vmem:[#allocation6 + $0x104] ss:$24 sps:$4 sm:$0xff]   ;;  %v1181_v46 = vld [vmem:[#allocation6 + $0x100] ss:$24 sps:$4 sm:$0xff]   ;;  %v1186_v47 = vld [vmem:[#allocation6 + $0x134] ss:$24 sps:$4 sm:$0xff]  }
  0x47   :  { %377 = vmatprep.subr.bf16.mxu0 %v1140_v17  ;;  %430 = vmatprep.subr.bf16.mxu1 %v1142_v18  ;;  %v1184_v48 = vld [vmem:[#allocation6 + $0x130] ss:$24 sps:$4 sm:$0xff]   ;;  %v1189_v49 = vld [vmem:[#allocation6 + $0x164] ss:$24 sps:$4 sm:$0xff]   ;;  %v1187_v50 = vld [vmem:[#allocation6 + $0x160] ss:$24 sps:$4 sm:$0xff]  }
  0x48   :  { %v1190_v51 = vld [vmem:[#allocation8 + $0x40] sm:$0xff]   ;;  %v1192_v53 = vld [vmem:[#allocation8 + $0x48] sm:$0xff]   ;;  %v1194_v55 = vld [vmem:[#allocation8 + $0x50] sm:$0xff]   ;;  %s948_s23 = sshll.u32 %s1364_s2, 4  ;;  %s949_s23 = int_to_ptr.vmem [resolvable:$true] %s948_s23 }
  0x49   :  { %v1191_v52 = vld [vmem:[#allocation8] sm:$0xff]   ;;  %v1193_v54 = vld [vmem:[#allocation8 + $0x8] sm:$0xff]   ;;  %v1196_v57 = vld [vmem:[#allocation8 + $0x10] sm:$0xff]   ;;  %s1328_s24 = scalar_lea.vmem %s949_s23, 512  ;;  %p1333_p11 = scmp.lt.s32.totalorder %s949_s23, %s949_s23 }
  0x4a   :  { %378 = vmatpush1.bf16.msra.mxu0 %v1144_v19  ;;  %431 = vmatpush1.bf16.msra.mxu1 %v1145_v20  ;;  %v1195_v56 = vld [vmem:[#allocation8 + $0x80] sm:$0xff]   ;;  %v1197_v58 = vld [vmem:[#allocation8 + $0x58] sm:$0xff]   ;;  %v1198_v59 = vld [vmem:[#allocation8 + $0x88] sm:$0xff]   ;;  %p1329_p10 = scmp.ne.s32.totalorder %s949_s23, %s1328_s24  ;;  %p1334_p12 = scmp.lt.s32.totalorder %s1328_s24, %s1328_s24 }
  0x4b   :  { %379 = vmatprep.subr.bf16.mxu0 %v1146_v21  ;;  %432 = vmatprep.subr.bf16.mxu1 %v1148_v22  ;;  %v1199_v60 = vld [vmem:[#allocation8 + $0x18] sm:$0xff]   ;;  %v1200_v61 = vld [vmem:[#allocation8 + $0x60] sm:$0xff]   ;;  %v1201_v62 = vld [vmem:[#allocation8 + $0x90] sm:$0xff]  }
  0x4c   :  { %v1202_v63 = vld [vmem:[#allocation8 + $0x20] sm:$0xff]   ;;  %v1204_v1 = vld [vmem:[#allocation8 + $0x98] sm:$0xff]   ;;  %v1205_v2 = vld [vmem:[#allocation8 + $0x28] sm:$0xff]   ;;  %p1335_p13 = por %p1334_p12, %p1333_p11 }
  0x4d   :  { %v1206_v3 = vld [vmem:[#allocation8 + $0x70] sm:$0xff]   ;;  %v1207_v4 = vld [vmem:[#allocation8 + $0xa0] sm:$0xff]   ;;  %v1209_v6 = vld [vmem:[#allocation8 + $0x78] sm:$0xff]  }
  0x4e   :  { %380 = vmatpush1.bf16.msra.mxu0 %v1150_v23  ;;  %433 = vmatpush1.bf16.msra.mxu1 %v1151_v24  ;;  %v1208_v5 = vld [vmem:[#allocation8 + $0x30] sm:$0xff]   ;;  %v1210_v7 = vld [vmem:[#allocation8 + $0xa8] sm:$0xff]   ;;  %v1211_v8 = vld [vmem:[#allocation8 + $0x38] sm:$0xff]   ;;  %p1336_p0 = pnand %p1335_p13, %p1329_p10 }
  0x4f   :  { %381 = vmatprep.subr.bf16.mxu0 %v1152_v25  ;;  %434 = vmatprep.subr.bf16.mxu1 %v1154_v26  ;;  %v1212_v9 = vld [vmem:[#allocation8 + $0xb0] sm:$0xff]   ;;  %v1213_v10 = vld [vmem:[#allocation8 + $0xb8] sm:$0xff]  }
  0x52   :  { %382 = vmatpush1.bf16.msra.mxu0 %v1156_v27  ;;  %435 = vmatpush1.bf16.msra.mxu1 %v1157_v28 }
  0x53   :  { %383 = vmatprep.subr.bf16.mxu0 %v1158_v29  ;;  %436 = vmatprep.subr.bf16.mxu1 %v1160_v30 }
  0x56   :  { %384 = vmatpush1.bf16.msra.mxu0 %v1162_v31  ;;  %437 = vmatpush1.bf16.msra.mxu1 %v1163_v32 }
  0x57   :  { %475 = vmatprep.subr.bf16.mxu0 %v1167_v33  ;;  %1047 = vmatprep.subr.bf16.mxu1 %v1190_v51 }
  0x59   :  { %402 = vmatmul.mubr.bf16.vlgmr.msra.gmra.mrb[0].mxu0 %v1164_v34  ;;  %455 = vmatmul.mubr.bf16.vlgmr.msra.gmra.mrb[0].mxu1 %v1164_v34 }
  0x5a   :  { %476 = vmatpush1.bf16.msra.mxu0 %v1165_v35  ;;  %411 = vmatprep.mubr.bf16.mxu0 %v1363_v0 }
  0x5b   :  { %477 = vmatprep.subr.bf16.mxu0 %v1170_v36  ;;  %464 = vmatprep.mubr.bf16.mxu1 %v1363_v0 }
  0x5c   :  { %1048 = vmatpush3.bf16.msra.mxu1 %v1191_v52 }
  0x5d   :  { %1049 = vmatprep.subr.bf16.mxu1 %v1192_v53 }
  0x5e   :  { %478 = vmatpush1.bf16.msra.mxu0 %v1168_v37 }
  0x5f   :  { %479 = vmatprep.subr.bf16.mxu0 %v1174_v38 }
  0x60   :  { %1050 = vmatpush3.bf16.msra.mxu1 %v1193_v54 }
  0x61   :  { %412 = vmatmul.mubr.bf16.gmra.mrb[4].mxu0 %v1171_v39  ;;  %465 = vmatmul.mubr.bf16.gmra.mrb[4].mxu1 %v1171_v39 }
  0x62   :  { %480 = vmatpush1.bf16.msra.mxu0 %v1172_v40  ;;  %507 = vmatprep.mubr.bf16.mxu0 %v1363_v0 }
  0x63   :  { %481 = vmatprep.subr.bf16.mxu0 %v1177_v41  ;;  %1051 = vmatprep.subr.bf16.mxu1 %v1194_v55 }
  0x64   :  { %1052 = vmatpush3.bf16.msra.mxu1 %v1196_v57 }
  0x65   :  { %1053 = vmatprep.subr.bf16.mxu1 %v1197_v58 }
  0x66   :  { %482 = vmatpush1.bf16.msra.mxu0 %v1175_v42 }
  0x67   :  { %483 = vmatprep.subr.bf16.mxu0 %v1180_v43 }
  0x68   :  { %1054 = vmatpush3.bf16.msra.mxu1 %v1199_v60 }
  0x69   :  { %1055 = vmatprep.subr.bf16.mxu1 %v1200_v61 }
  0x6a   :  { %484 = vmatpush1.bf16.msra.mxu0 %v1178_v44 }
  0x6b   :  { %485 = vmatprep.subr.bf16.mxu0 %v1183_v45 }
  0x6c   :  { %1056 = vmatpush3.bf16.msra.mxu1 %v1202_v63 }
  0x6e   :  { %486 = vmatpush1.bf16.msra.mxu0 %v1181_v46 }
  0x6f   :  { %487 = vmatprep.subr.bf16.mxu0 %v1186_v47 }
  0x72   :  { %488 = vmatpush1.bf16.msra.mxu0 %v1184_v48 }
  0x73   :  { %489 = vmatprep.subr.bf16.mxu0 %v1189_v49 }
  0x76   :  { %490 = vmatpush1.bf16.msra.mxu0 %v1187_v50 }
  0x77   :  { %1085 = vmatprep.subr.bf16.mxu0 %v1195_v56 }
  0x79   :  { %508 = vmatmul.mubr.bf16.vlgmr.msra.gmra.mrb[8].mxu0 %v1164_v34 }
  0x7a   :  { %517 = vmatprep.mubr.bf16.mxu0 %v1363_v0  ;;  %1086 = vmatpush3.bf16.msra.mxu0 %v1195_v56  ;;  %v1203_v0 = vld [vmem:[#allocation8 + $0x68] sm:$0xff]  }
  0x7b   :  { %1087 = vmatprep.subr.bf16.mxu0 %v1198_v59  ;;  %1057 = vmatprep.subr.bf16.mxu1 %v1203_v0 }
  0x7c   :  { %1058 = vmatpush3.bf16.msra.mxu1 %v1205_v2 }
  0x7d   :  { %1059 = vmatprep.subr.bf16.mxu1 %v1206_v3 }
  0x7e   :  { %1088 = vmatpush3.bf16.msra.mxu0 %v1198_v59 }
  0x7f   :  { %1089 = vmatprep.subr.bf16.mxu0 %v1201_v62 }
  0x80   :  { %1060 = vmatpush3.bf16.msra.mxu1 %v1208_v5 }
  0x81   :  { %518 = vmatmul.mubr.bf16.gmra.mrb[12].mxu0 %v1171_v39  ;;  %1061 = vmatprep.subr.bf16.mxu1 %v1209_v6 }
  0x82   :  { %1090 = vmatpush3.bf16.msra.mxu0 %v1201_v62 }
  0x83   :  { %1091 = vmatprep.subr.bf16.mxu0 %v1204_v1 }
  0x84   :  { %1062 = vmatpush3.bf16.msra.mxu1 %v1211_v8 }
  0x86   :  { %1092 = vmatpush3.bf16.msra.mxu0 %v1204_v1 }
  0x87   :  { %1093 = vmatprep.subr.bf16.mxu0 %v1207_v4 }
  0x8a   :  { %1094 = vmatpush3.bf16.msra.mxu0 %v1207_v4 }
  0x8b   :  { %1095 = vmatprep.subr.bf16.mxu0 %v1210_v7 }
  0x8e   :  { %1096 = vmatpush3.bf16.msra.mxu0 %v1210_v7 }
  0x8f   :  { %1097 = vmatprep.subr.bf16.mxu0 %v1212_v9 }
  0x92   :  { %1098 = vmatpush3.bf16.msra.mxu0 %v1212_v9 }
  0x93   :  { %1099 = vmatprep.subr.bf16.mxu0 %v1213_v10 }
  0x96   :  { %1100 = vmatpush3.bf16.msra.mxu0 %v1213_v10 }
 0x12c   :  { %v1429_v11 = vpop.f32.mrb[0].mxu0  ;;  %v1431_v12 = vpop.f32.mrb[0].mxu1 }
 0x12d   :  { %v1011_v13 = vmul.f32 -1.442695, %v1429_v11  ;;  %v1013_v14 = vmul.f32 -1.442695, %v1431_v12  ;;  %v1435_v15 = vpop.f32.mrb[1].mxu0  ;;  %v1437_v16 = vpop.f32.mrb[1].mxu1 }
 0x12e   :  { %v1012_v17 = vmul.f32 -1.442695, %v1435_v15  ;;  %v1440_v18 = vpop.f32.mrb[2].mxu0  ;;  %v1442_v19 = vpop.f32.mrb[2].mxu1 }
 0x12f   :  { %1214 = vpow2.f32 %v1011_v13  ;;  %v1014_v20 = vmul.f32 -1.442695, %v1440_v18  ;;  %v1016_v21 = vmul.f32 -1.442695, %v1442_v19  ;;  %v1446_v22 = vpop.f32.mrb[3].mxu0  ;;  %v1448_v23 = vpop.f32.mrb[3].mxu1 }
 0x130   :  { %1216 = vpow2.f32 %v1013_v14  ;;  %v1015_v24 = vmul.f32 -1.442695, %v1446_v22 }
 0x131   :  { %1218 = vpow2.f32 %v1012_v17 }
 0x132   :  { %1220 = vpow2.f32 %v1014_v20 }
 0x133   :  { %1222 = vpow2.f32 %v1016_v21 }
 0x134   :  { %1224 = vpow2.f32 %v1015_v24  ;;  %v1451_v25 = vpop.f32.mrb[4].mxu0  ;;  %v1453_v26 = vpop.f32.mrb[4].mxu1 }
 0x135   :  { %v1017_v27 = vmul.f32 -1.442695, %v1451_v25  ;;  %v1019_v28 = vmul.f32 -1.442695, %v1453_v26  ;;  %v1457_v29 = vpop.f32.mrb[5].mxu0  ;;  %v1459_v30 = vpop.f32.mrb[5].mxu1 }
 0x136   :  { %v1018_v31 = vmul.f32 -1.442695, %v1457_v29  ;;  %v1462_v32 = vpop.f32.mrb[6].mxu0  ;;  %v1464_v33 = vpop.f32.mrb[6].mxu1 }
 0x137   :  { %1226 = vpow2.f32 %v1017_v27  ;;  %v1020_v34 = vmul.f32 -1.442695, %v1462_v32  ;;  %v1022_v35 = vmul.f32 -1.442695, %v1464_v33  ;;  %v1468_v36 = vpop.f32.mrb[7].mxu0  ;;  %v1470_v37 = vpop.f32.mrb[7].mxu1 }
 0x138   :  { %1228 = vpow2.f32 %v1019_v28  ;;  %v1021_v49 = vmul.f32 -1.442695, %v1468_v36 }
 0x139   :  { %v1215_v38 = vpop.eup %1214  ;;  %1230 = vpow2.f32 %v1018_v31 }
 0x13a   :  { %v1217_v39 = vpop.eup %1216  ;;  %v564_v40 = vadd.f32 1.0, %v1215_v38  ;;  %1232 = vpow2.f32 %v1020_v34 }
 0x13b   :  { %v1219_v41 = vpop.eup %1218  ;;  %v566_v42 = vadd.f32 1.0, %v1217_v39  ;;  %1234 = vpow2.f32 %v1022_v35 }
 0x13c   :  { %v1221_v43 = vpop.eup %1220  ;;  %1236 = vrcp.f32 %v564_v40  ;;  %v565_v44 = vadd.f32 1.0, %v1219_v41 }
 0x13d   :  { %v1223_v45 = vpop.eup %1222  ;;  %1238 = vrcp.f32 %v566_v42  ;;  %v567_v46 = vadd.f32 1.0, %v1221_v43 }
 0x13e   :  { %v1225_v47 = vpop.eup %1224  ;;  %1240 = vrcp.f32 %v565_v44  ;;  %v569_v48 = vadd.f32 1.0, %v1223_v45 }
 0x13f   :  { %1242 = vrcp.f32 %v567_v46  ;;  %v568_v50 = vadd.f32 1.0, %v1225_v47 }
 0x140   :  { %1244 = vrcp.f32 %v569_v48 }
 0x141   :  { %v1227_v51 = vpop.eup %1226  ;;  %1246 = vrcp.f32 %v568_v50 }
 0x142   :  { %v1229_v52 = vpop.eup %1228  ;;  %v570_v53 = vadd.f32 1.0, %v1227_v51  ;;  %1248 = vpow2.f32 %v1021_v49 }
 0x143   :  { %v1231_v54 = vpop.eup %1230  ;;  %v572_v55 = vadd.f32 1.0, %v1229_v52 }
 0x144   :  { %v1233_v56 = vpop.eup %1232  ;;  %1250 = vrcp.f32 %v570_v53  ;;  %v571_v57 = vadd.f32 1.0, %v1231_v54 }
 0x145   :  { %v1235_v58 = vpop.eup %1234  ;;  %1252 = vrcp.f32 %v572_v55  ;;  %v573_v59 = vadd.f32 1.0, %v1233_v56 }
 0x146   :  { %v1237_v60 = vpop.eup %1236  ;;  %1254 = vrcp.f32 %v571_v57  ;;  %v575_v61 = vadd.f32 1.0, %v1235_v58 }
 0x147   :  { %v1239_v62 = vpop.eup %1238  ;;  %v600_v63 = vmul.f32 %v1237_v60, %v1429_v11  ;;  %1256 = vrcp.f32 %v573_v59 }
 0x148   :  { %v1241_v0 = vpop.eup %1240  ;;  %1258 = vrcp.f32 %v575_v61  ;;  %v602_v8 = vmul.f32 %v1239_v62, %v1431_v12 }
 0x149   :  { %v1243_v1 = vpop.eup %1242  ;;  %v612_v2 = vmul.f32 %v600_v63, %v1437_v16  ;;  %v601_v6 = vmul.f32 %v1241_v0, %v1435_v15 }
 0x14a   :  { %v1245_v3 = vpop.eup %1244  ;;  %v603_v4 = vmul.f32 %v1243_v1, %v1440_v18 }
 0x14b   :  { %v1247_v5 = vpop.eup %1246  ;;  %v605_v16 = vmul.f32 %v1245_v3, %v1442_v19 }
 0x14c   :  { %v1249_v7 = vpop.eup %1248  ;;  %v615_v9 = vmul.f32 %v603_v4, %v1448_v23  ;;  %v509_v10 = vpop.f32.mrb[8].mxu0  ;;  %v604_v11 = vmul.f32 %v1247_v5, %v1446_v22 }
 0x14d   :  { %v574_v13 = vadd.f32 1.0, %v1249_v7  ;;  %v613_v14 = vmul.f32 %v601_v6, %v509_v10  ;;  %v511_v17 = vpop.f32.mrb[9].mxu0 }
 0x14e   :  { %v1251_v20 = vpop.eup %1250  ;;  %v628_v21 = vpack.c.bf16 %v615_v9, %v612_v2  ;;  %v614_v24 = vmul.f32 %v602_v8, %v511_v17  ;;  %v513_v18 = vpop.f32.mrb[10].mxu0 }
 0x14f   :  { %v1253_v27 = vpop.eup %1252  ;;  %v606_v15 = vmul.f32 %v1251_v20, %v1451_v25  ;;  %1260 = vrcp.f32 %v574_v13  ;;  %v616_v28 = vmul.f32 %v604_v11, %v513_v18  ;;  %v515_v12 = vpop.f32.mrb[11].mxu0 }
 0x150   :  { %v1255_v31 = vpop.eup %1254  ;;  %v617_v23 = vmul.f32 %v605_v16, %v515_v12  ;;  %v608_v41 = vmul.f32 %v1253_v27, %v1453_v26 }
 0x151   :  { %v1257_v34 = vpop.eup %1256  ;;  %v618_v22 = vmul.f32 %v606_v15, %v1459_v30  ;;  %v629_v35 = vpack.c.bf16 %v616_v28, %v613_v14  ;;  %v607_v19 = vmul.f32 %v1255_v31, %v1457_v29 }
 0x152   :  { %v609_v38 = vmul.f32 %v1257_v34, %v1462_v32  ;;  %v630_v39 = vpack.c.bf16 %v617_v23, %v614_v24  ;;  %v1259_v40 = vpop.eup %1258 }
 0x153   :  { %858 = vmatprep.mubr.bf16.mxu1 %v629_v35  ;;  %v611_v45 = vmul.f32 %v1259_v40, %v1464_v33 }
 0x154   :  { %v621_v25 = vmul.f32 %v609_v38, %v1470_v37  ;;  %v519_v42 = vpop.f32.mrb[12].mxu0  ;;  %859 = vmatmul.mubr.bf16.vlgmr.msra.gmra.mrb[8].mxu1 %v628_v21  ;;  %1101 = vmatprep.mubr.bf16.mxu0 %v630_v39 }
 0x155   :  { %v619_v43 = vmul.f32 %v607_v19, %v519_v42  ;;  %v521_v44 = vpop.f32.mrb[13].mxu0 }
 0x156   :  { %v631_v30 = vpack.c.bf16 %v621_v25, %v618_v22  ;;  %v620_v46 = vmul.f32 %v608_v41, %v521_v44  ;;  %v523_v47 = vpop.f32.mrb[14].mxu0 }
 0x157   :  { %v525_v32 = vpop.f32.mrb[15].mxu0 }
 0x158   :  { %v623_v48 = vmul.f32 %v611_v45, %v525_v32 }
 0x159   :  { %v1261_v49 = vpop.eup %1260 }
 0x15a   :  { %v610_v29 = vmul.f32 %v1261_v49, %v1468_v36  ;;  %v633_v50 = vpack.c.bf16 %v623_v48, %v620_v46 }
 0x15c   :  { %v622_v51 = vmul.f32 %v610_v29, %v523_v47  ;;  %1102 = vmatmul.mubr.bf16.vlgmr.msra.gmra.mrb[16].mxu0 %v633_v50 }
 0x15e   :  { %v632_v26 = vpack.c.bf16 %v622_v51, %v619_v43 }
 0x160   :  { %866 = vmatprep.mubr.bf16.mxu1 %v632_v26 }
 0x161   :  { %867 = vmatmul.mubr.bf16.gmra.mrb[12].mxu1 %v631_v30 }
 0x227   :  { %v1063_v37 = vpop.f32.mrb[8].mxu1 }
 0x228   :  { %v1064_v52 = vpop.f32.mrb[9].mxu1 }
 0x229   :  { %v1065_v53 = vadd.f32 %v1064_v52, %v1063_v37  ;;  %v1066_v54 = vpop.f32.mrb[10].mxu1 }
 0x22a   :  { %v1067_v55 = vpop.f32.mrb[11].mxu1 }
 0x22b   :  { %v1068_v33 = vadd.f32 %v1067_v55, %v1066_v54 }
 0x22f   :  { %v1103_v56 = vpop.f32.mrb[16].mxu0 }
 0x230   :  { %v909_v57 = vpop.f32.mrb[17].mxu0 }
 0x231   :  { %v910_v58 = vadd.f32 %v1065_v53, %v909_v57  ;;  %v1104_v59 = vpop.f32.mrb[18].mxu0 }
 0x232   :  { %v912_v60 = vpop.f32.mrb[19].mxu0 }
 0x233   :  { %939 = vst [vmem:[#allocation9] sm:$0xff] %v910_v58  ;;  %v913_v61 = vadd.f32 %v1068_v33, %v912_v60 }
 0x234   :  { %v1069_v36 = vpop.f32.mrb[12].mxu1 }
 0x235   :  { %v1070_v62 = vpop.f32.mrb[13].mxu1  ;;  %940 = vst [vmem:[#allocation9 + $0x8] sm:$0xff] %v913_v61 }
 0x236   :  { %v1071_v63 = vadd.f32 %v1070_v62, %v1069_v36  ;;  %v1072_v0 = vpop.f32.mrb[14].mxu1 }
 0x237   :  { %v1073_v1 = vpop.f32.mrb[15].mxu1 }
 0x238   :  { %v918_v2 = vadd.f32 %v1103_v56, %v1071_v63  ;;  %v1074_v3 = vadd.f32 %v1073_v1, %v1072_v0 }
 0x23a   :  { %941 = vst [vmem:[#allocation9 + $0x10] sm:$0xff] %v918_v2  ;;  %v921_v4 = vadd.f32 %v1104_v59, %v1074_v3 }
 0x23c   :  { %942 = vst [vmem:[#allocation9 + $0x18] sm:$0xff] %v921_v4 }
 0x23d   :  { %1339 = shalt.err (!%p1336_p0)
}
 0x23e   :  { %s1340_s27 = scalar_lea.hbm %s1504_s3, 512 }
 0x23f   :  { %p1341_p1 = scmp.ne.s32.totalorder %s1504_s3, %s1340_s27  ;;  %p1344_p2 = scmp.lt.u32.totalorder %s1340_s27, %s1504_s3 }
 0x241   :  { %p1346_p3 = pnand %p1344_p2, %p1341_p1 }
 0x243   :  { %1349 = shalt.err (!%p1346_p3)
}
 0x244   :  { %s1365_s5 = smov 128   ;;  %s1366_s6 = smov 8  }
 0x245   :  { %954 = dma.vmem_to_hbm [thread:$0]  %s949_s23, 512, %s1504_s3, [#allocation5], %s1365_s5, %s1365_s5, %s1366_s6  }
 0x246   :  { %1354 = dma.done.wait [#allocation5], 512  }
 0x247   :  { %1355 = vsyncadd [#allocation5], 4294966784 }
 0x248   :  { %958 = vsyncpa [#allocation4], 1 }
 0x249   :  { %959 = vsyncpa [#allocation7], 1 }
 0x24a   :  { %960 = vsyncpa [#allocation5], 1 }

</bundles_post_ra>
